<compile_context>
chip_gen: v5e
topology: v5e:2x2
jax: 0.10.0
libtpu: 0.0.40
codegen_flags: <defaults>
</compile_context>

<pallas_src>
import functools

import jax
import jax.numpy as jnp
from jax.experimental import pallas as pl
from jax.experimental.pallas import tpu as pltpu


def _round_up(x, m):
    return (x + m - 1) // m * m


def _ceil_div(a, b):
    return -(-a // b)


@functools.lru_cache(maxsize=None)
def _vmem_limit_bytes():
    """Per-generation scoped-VMEM budget (~75% of physical, <= 96 MiB)."""
    try:
        cap = int(pltpu.get_tpu_info().vmem_capacity_bytes)
    except Exception:
        cap = 64 * 1024 * 1024  # conservative (v7x-sized) fallback
    return int(min(96 * 1024 * 1024, cap * 3 // 4))


def _choose_tm(M, target):
    """Pick a row tile: prefer a multiple-of-8 divisor of M near `target`
    (avoids the jnp.pad HBM copy); otherwise pad M up to a tile multiple."""
    target = max(8, _round_up(target, 8))
    for tm in range(target, 7, -8):
        if M % tm == 0:
            return tm, M
    return target, _round_up(M, target)


# ---------------------------------------------------------------------------
# Kernels: fused (X @ W) + bias [+ residual | + Xs @ Ws] [-> relu]
# BN scale is folded into W in the wrapper, so kernels only add the bias.
# Inputs may be bf16; accumulation and bias/ReLU math are f32.
# ---------------------------------------------------------------------------
def _matmul_bias_kernel(x_ref, w_ref, b_ref, o_ref, *, relu):
    acc = jnp.dot(x_ref[...], w_ref[...], preferred_element_type=jnp.float32)
    out = acc + b_ref[...]
    if relu:
        out = jnp.maximum(out, 0.0)
    o_ref[...] = out.astype(o_ref.dtype)


def _matmul_bias_add_relu_kernel(x_ref, w_ref, b_ref, r_ref, o_ref):
    # identity shortcut: relu(x @ w + b + residual)
    acc = jnp.dot(x_ref[...], w_ref[...], preferred_element_type=jnp.float32)
    out = acc + b_ref[...] + r_ref[...].astype(jnp.float32)
    o_ref[...] = jnp.maximum(out, 0.0).astype(o_ref.dtype)


def _matmul2_bias_relu_kernel(x_ref, w_ref, b_ref, x2_ref, w2_ref, o_ref):
    # projection shortcut fused in: relu(x @ w + x2 @ w2 + b)
    acc = jnp.dot(x_ref[...], w_ref[...], preferred_element_type=jnp.float32)
    acc = acc + jnp.dot(x2_ref[...], w2_ref[...],
                        preferred_element_type=jnp.float32)
    out = acc + b_ref[...]
    o_ref[...] = jnp.maximum(out, 0.0).astype(o_ref.dtype)


def fused_matmul(x, w, bias, *, relu, residual=None, x2=None, w2=None,
                 compute_dtype=jnp.bfloat16):
    """Row-tiled relu?((M,K)@(K,N) + bias [+ residual | + (M,K2)@(K2,N)])."""
    M, K = x.shape
    N = w.shape[1]
    out_dtype = x.dtype
    cbytes = jnp.dtype(compute_dtype).itemsize
    obytes = jnp.dtype(out_dtype).itemsize
    K2 = x2.shape[1] if x2 is not None else 0

    # VMEM budget: weights + bias are resident (double-buffered by the
    # pipeline); activation / residual / output row tiles scale with tm.
    resident = 2 * (K * N * cbytes + N * 4 + K2 * N * cbytes)
    per_row = 2 * (K * cbytes + N * obytes
                   + (N * cbytes if residual is not None else 0)
                   + (K2 * cbytes if x2 is not None else 0))
    budget = max(_vmem_limit_bytes() - resident - (4 << 20), 1 << 20)
    tm_cap = int(min(512, max(8, budget // per_row // 8 * 8)))

    # Target >= 8 grid steps (both v7x TensorCores busy, DMA pipeline deep);
    # floor the tile at 256 only when M is big enough that both hold.
    target = _round_up(_ceil_div(M, 8), 8)
    if M >= 8 * 256:
        target = max(target, 256)
    target = min(target, tm_cap)
    tm, Mp = _choose_tm(M, target)

    def pad_rows(a):
        return a if Mp == M else jnp.pad(a, ((0, Mp - M), (0, 0)))

    args = [pad_rows(x).astype(compute_dtype),
            w.astype(compute_dtype),
            bias.reshape(1, N).astype(jnp.float32)]
    in_specs = [
        pl.BlockSpec((tm, K), lambda i: (i, 0)),   # activation row tile
        pl.BlockSpec((K, N), lambda i: (0, 0)),    # full (scale-folded) weight
        pl.BlockSpec((1, N), lambda i: (0, 0)),    # folded BN bias (f32)
    ]

    if residual is not None:
        kernel = _matmul_bias_add_relu_kernel
        in_specs.append(pl.BlockSpec((tm, N), lambda i: (i, 0)))
        args.append(pad_rows(residual).astype(compute_dtype))
    elif x2 is not None:
        kernel = _matmul2_bias_relu_kernel
        in_specs += [pl.BlockSpec((tm, K2), lambda i: (i, 0)),
                     pl.BlockSpec((K2, N), lambda i: (0, 0))]
        args += [pad_rows(x2).astype(compute_dtype), w2.astype(compute_dtype)]
    else:
        kernel = functools.partial(_matmul_bias_kernel, relu=relu)

    out = pl.pallas_call(
        kernel,
        out_shape=jax.ShapeDtypeStruct((Mp, N), out_dtype),
        grid=(Mp // tm,),
        in_specs=in_specs,
        out_specs=pl.BlockSpec((tm, N), lambda i: (i, 0)),
        compiler_params=pltpu.CompilerParams(
            dimension_semantics=("parallel",),
            vmem_limit_bytes=_vmem_limit_bytes()),
    )(*args)
    return out if Mp == M else out[:M]


# ---------------------------------------------------------------------------
# Direct 3x3 conv (pad=1, stride) + folded BN + ReLU — no im2col in HBM.
# For stride>1 the padded input is pre-split into stride^2 polyphase
# components so each of the 9 taps is a contiguous static slice in VMEM.
# The tap loop is a statically unrolled Python loop, so the partial sums live
# in vregs (no VMEM scratch round-trips); the output block is flat
# (ho*wo, cout) so the store is a plain lane-dense vst.
# ---------------------------------------------------------------------------
def _conv3x3_bias_relu_kernel(xp_ref, w_ref, b_ref, o_ref, *, stride, ho, wo):
    s = stride
    c = xp_ref.shape[-1]
    cout = o_ref.shape[-1]
    acc = jnp.zeros((ho * wo, cout), jnp.float32)
    for dh in range(3):
        for dw in range(3):
            phase = xp_ref[0, (dh % s) * s + (dw % s)]      # (hp, wp, c)
            oh, ow = dh // s, dw // s
            patch = phase[oh:oh + ho, ow:ow + wo, :]        # (ho, wo, c)
            acc = acc + jnp.dot(patch.reshape(ho * wo, c),
                                w_ref[dh * 3 + dw],
                                preferred_element_type=jnp.float32)
    out = jnp.maximum(acc + b_ref[...], 0.0)
    o_ref[0] = out.astype(o_ref.dtype)


def conv3x3_bn_relu(x_nhwc, w_oihw, scale, bias, stride, compute_dtype):
    n, h, w, c = x_nhwc.shape
    cout = w_oihw.shape[0]
    s = stride
    ho = (h + 2 - 3) // s + 1
    wo = (w + 2 - 3) // s + 1
    hp = ho + _ceil_div(2, s)      # rows per polyphase component
    wp = wo + _ceil_div(2, s)

    if s == 1:
        # Plain zero-pad; the phase axis is a free size-1 reshape (no
        # polyphase transpose pass over the activation).
        # TODO(synk): have conv1 write straight into this padded canvas via
        # its out_spec/index_map to save one HBM round-trip of out1.
        padded = jnp.pad(x_nhwc, ((0, 0), (1, 1), (1, 1), (0, 0)))
        phases = padded.reshape(n, 1, hp, wp, c)
    else:
        # Zero-pad onto an (s*hp, s*wp) canvas with the image at offset (1,1),
        # then split into the s*s polyphase components (single XLA pass).
        canvas = jnp.zeros((n, s * hp, s * wp, c), x_nhwc.dtype)
        canvas = canvas.at[:, 1:1 + h, 1:1 + w, :].set(x_nhwc)
        phases = canvas.reshape(n, hp, s, wp, s, c)
        phases = jnp.transpose(phases, (0, 2, 4, 1, 3, 5))
        phases = phases.reshape(n, s * s, hp, wp, c)
    phases = phases.astype(compute_dtype)

    wmat = jnp.transpose(w_oihw, (2, 3, 1, 0)).reshape(9, c, cout)
    wmat = (wmat * scale.reshape(1, 1, cout)).astype(compute_dtype)
    bias2 = bias.reshape(1, cout).astype(jnp.float32)

    # TODO(synk): tile the grid over output rows as well as batch (halo'd
    # phase blocks) for large spatial extents / batch-1 on v7x.
    # TODO(synk): pack the 3 dw-taps along K (3 matmuls of K=3c) for
    # low-channel stages to better fill the 256-deep MXU on v6e/v7x.
    out = pl.pallas_call(
        functools.partial(_conv3x3_bias_relu_kernel, stride=s, ho=ho, wo=wo),
        out_shape=jax.ShapeDtypeStruct((n, ho * wo, cout), compute_dtype),
        grid=(n,),
        in_specs=[
            pl.BlockSpec((1, s * s, hp, wp, c), lambda i: (i, 0, 0, 0, 0)),
            pl.BlockSpec((9, c, cout), lambda i: (0, 0, 0)),
            pl.BlockSpec((1, cout), lambda i: (0, 0)),
        ],
        out_specs=pl.BlockSpec((1, ho * wo, cout), lambda i: (i, 0, 0)),
        compiler_params=pltpu.CompilerParams(
            dimension_semantics=("parallel",),
            vmem_limit_bytes=_vmem_limit_bytes()),
    )(phases, wmat, bias2)
    return out.reshape(n, ho, wo, cout)


# ---------------------------------------------------------------------------
# BN folding and the full Bottleneck forward
# ---------------------------------------------------------------------------
def _bn_fold(gamma, beta, mean, var, eps=1e-5):
    scale = gamma / jnp.sqrt(var + eps)
    return scale, beta - mean * scale


def bottleneck_forward(x_nchw, params, stride, compute_dtype=jnp.bfloat16):
    # TODO(synk): BatchNorm uses inference-mode running stats; PyTorch default
    # training-mode batch statistics are not reproduced.
    n, cin, h, w = x_nchw.shape
    orig_dtype = x_nchw.dtype
    # NCHW -> NHWC only at the block boundary (a stack of blocks should chain
    # in NHWC / compute dtype and convert once at the model boundary).
    x = jnp.transpose(x_nchw, (0, 2, 3, 1)).astype(compute_dtype)

    planes = params["w1"].shape[0]
    exp_planes = params["w3"].shape[0]

    # conv1 (1x1) + bn1 + relu   (BN scale folded into weight columns)
    s1, b1 = _bn_fold(*params["bn1"])
    w1 = params["w1"].reshape(planes, cin).T * s1.reshape(1, planes)
    out1 = fused_matmul(x.reshape(n * h * w, cin), w1, b1, relu=True,
                        compute_dtype=compute_dtype)
    out1 = out1.reshape(n, h, w, planes)

    # conv2 (3x3, stride, pad=1) + bn2 + relu   (direct conv kernel)
    s2, b2 = _bn_fold(*params["bn2"])
    out2_nhwc = conv3x3_bn_relu(out1, params["w2"], s2, b2, stride,
                                compute_dtype)
    _, ho, wo, _ = out2_nhwc.shape
    out2 = out2_nhwc.reshape(n * ho * wo, planes)

    # conv3 (1x1) + bn3 + shortcut + final relu — one fused kernel, so the
    # widest (expansion*planes) tensor is produced exactly once.
    s3, b3 = _bn_fold(*params["bn3"])
    w3 = params["w3"].reshape(exp_planes, planes).T * s3.reshape(1, exp_planes)
    if stride != 1 or cin != exp_planes:
        ss, bs = _bn_fold(*params["bns"])
        ws = params["ws"].reshape(exp_planes, cin).T * ss.reshape(1, exp_planes)
        xs = x[:, ::stride, ::stride, :].reshape(n * ho * wo, cin)
        out3 = fused_matmul(out2, w3, b3 + bs, relu=True, x2=xs, w2=ws,
                            compute_dtype=compute_dtype)
    else:
        out3 = fused_matmul(out2, w3, b3, relu=True,
                            residual=x.reshape(n * h * w, cin),
                            compute_dtype=compute_dtype)

    out3 = out3.reshape(n, ho, wo, exp_planes)
    return jnp.transpose(out3, (0, 3, 1, 2)).astype(orig_dtype)


# ---------------------------------------------------------------------------
# Pure-JAX reference (lax convs) for correctness checking
# ---------------------------------------------------------------------------
def reference_forward(x, params, stride):
    def conv(x, w, s=1, p=0):
        return jax.lax.conv_general_dilated(
            x, w, (s, s), [(p, p), (p, p)],
            dimension_numbers=("NCHW", "OIHW", "NCHW"),
            precision=jax.lax.Precision.HIGHEST)

    def bn(x, prm):
        g, b, m, v = prm
        sc = g / jnp.sqrt(v + 1e-5)
        return x * sc[None, :, None, None] + (b - m * sc)[None, :, None, None]

    out = jax.nn.relu(bn(conv(x, params["w1"]), params["bn1"]))
    out = jax.nn.relu(bn(conv(out, params["w2"], stride, 1), params["bn2"]))
    out = bn(conv(out, params["w3"]), params["bn3"])
    if stride != 1 or x.shape[1] != params["w3"].shape[0]:
        sc = bn(conv(x, params["ws"], stride), params["bns"])
    else:
        sc = x
    return jax.nn.relu(out + sc)


# ---------------------------------------------------------------------------
if __name__ == "__main__":
    key = jax.random.PRNGKey(0)

    def bn_params(k, c):
        k1, k2, k3, k4 = jax.random.split(k, 4)
        gamma = jax.random.uniform(k1, (c,), jnp.float32, 0.5, 1.5)
        beta = jax.random.normal(k2, (c,), jnp.float32) * 0.1
        mean = jax.random.normal(k3, (c,), jnp.float32) * 0.1
        var = jax.random.uniform(k4, (c,), jnp.float32, 0.5, 1.5)
        return (gamma, beta, mean, var)

    def make_params(k, in_planes, planes, with_proj):
        exp_planes = 4 * planes
        ks = jax.random.split(k, 8)
        p = {
            "w1": jax.random.normal(ks[0], (planes, in_planes, 1, 1), jnp.float32) * 0.2,
            "w2": jax.random.normal(ks[1], (planes, planes, 3, 3), jnp.float32) * 0.1,
            "w3": jax.random.normal(ks[2], (exp_planes, planes, 1, 1), jnp.float32) * 0.2,
            "bn1": bn_params(ks[3], planes),
            "bn2": bn_params(ks[4], planes),
            "bn3": bn_params(ks[5], exp_planes),
        }
        if with_proj:
            p["ws"] = jax.random.normal(
                ks[6], (exp_planes, in_planes, 1, 1), jnp.float32) * 0.2
            p["bns"] = bn_params(ks[7], exp_planes)
        return p

    configs = [
        # (in_planes, planes, stride, n, h, w)
        (4, 4, 2, 2, 16, 16),    # projection shortcut, strided
        (16, 4, 1, 2, 16, 16),   # identity shortcut (in == 4*planes, stride 1)
    ]
    for idx, (cin, planes, stride, n, h, w) in enumerate(configs):
        exp_planes = 4 * planes
        with_proj = stride != 1 or cin != exp_planes
        k_x, k_p = jax.random.split(jax.random.fold_in(key, idx))
        x = jax.random.normal(k_x, (n, cin, h, w), jnp.float32)
        params = make_params(k_p, cin, planes, with_proj)

        ref = reference_forward(x, params, stride)
        ho = (h + 2 - 3) // stride + 1
        wo = (w + 2 - 3) // stride + 1

        # Float32 compute mode: tight check against the HIGHEST-precision ref.
        out_f32 = jax.block_until_ready(
            bottleneck_forward(x, params, stride, compute_dtype=jnp.float32))
        assert out_f32.shape == ref.shape == (n, exp_planes, ho, wo)
        max_err_f32 = float(jnp.max(jnp.abs(out_f32 - ref)))
        assert jnp.allclose(out_f32, ref, atol=1e-3, rtol=1e-3), (
            f"config {idx} (f32): max err {max_err_f32}")

        # bf16 compute mode (default / production): bf16-rounding tolerance.
        out_bf16 = jax.block_until_ready(bottleneck_forward(x, params, stride))
        assert out_bf16.shape == ref.shape
        max_err = float(jnp.max(jnp.abs(out_bf16 - ref)))
        ref_max = float(jnp.max(jnp.abs(ref)))
        assert max_err <= 0.05 * ref_max + 0.05, (
            f"config {idx} (bf16): max err {max_err} (ref max {ref_max})")

    print("KERNEL_OK")
</pallas_src>

<mosaic_0001>
module attributes {stable_mosaic.version = 11 : i64} {
  func.func @_matmul_bias_kernel(%arg0: i32, %arg1: memref<64x4xf32, #tpu.memory_space<vmem>>, %arg2: memref<4x4xf32, #tpu.memory_space<vmem>>, %arg3: memref<1x4xf32, #tpu.memory_space<vmem>>, %arg4: memref<64x4xf32, #tpu.memory_space<vmem>>) attributes {dimension_semantics = [#tpu.dimension_semantics<parallel>], iteration_bounds = array<i64: 8>, scalar_prefetch = 0 : i64, scratch_operands = 0 : i64, tpu.core_type = #tpu.core_type<tc>, window_params = [{transform_indices = @transform_0, window_bounds = array<i64: 64, 4>}, {pipeline_mode = #tpu.pipeline_mode<synchronous>, transform_indices = @transform_1, window_bounds = array<i64: 4, 4>}, {pipeline_mode = #tpu.pipeline_mode<synchronous>, transform_indices = @transform_2, window_bounds = array<i64: 1, 4>}, {transform_indices = @transform_3, window_bounds = array<i64: 64, 4>}]} {
    %c0 = arith.constant 0 : index
    %c0_0 = arith.constant 0 : index
    %0 = vector.load %arg1[%c0, %c0_0] : memref<64x4xf32, #tpu.memory_space<vmem>>, vector<64x4xf32>
    %c0_1 = arith.constant 0 : index
    %c0_2 = arith.constant 0 : index
    %1 = vector.load %arg2[%c0_1, %c0_2] : memref<4x4xf32, #tpu.memory_space<vmem>>, vector<4x4xf32>
    %cst = arith.constant dense<0.000000e+00> : vector<64x4xf32>
    %2 = tpu.matmul %0, %1, %cst {dimension_numbers = #tpu.dot_dimension_numbers<[1], [0], [0], [1], [0, 0, 1, 1], [], []>} : vector<64x4xf32>, vector<4x4xf32>, vector<64x4xf32> -> vector<64x4xf32>
    %c0_3 = arith.constant 0 : index
    %c0_4 = arith.constant 0 : index
    %3 = vector.load %arg3[%c0_3, %c0_4] : memref<1x4xf32, #tpu.memory_space<vmem>>, vector<1x4xf32>
    %4 = vector.broadcast %3 : vector<1x4xf32> to vector<64x4xf32>
    %5 = arith.addf %2, %4 : vector<64x4xf32>
    %cst_5 = arith.constant 0.000000e+00 : f32
    %6 = vector.broadcast %cst_5 : f32 to vector<64x4xf32>
    %7 = arith.maximumf %5, %6 : vector<64x4xf32>
    %c0_6 = arith.constant 0 : index
    %c0_7 = arith.constant 0 : index
    %8 = vector.load %arg4[%c0_6, %c0_7] : memref<64x4xf32, #tpu.memory_space<vmem>>, vector<64x4xf32>
    tpu.vector_store %arg4[%c0_6, %c0_7], %7 {strides = array<i32>} : memref<64x4xf32, #tpu.memory_space<vmem>>, vector<64x4xf32>,
    return
  }
  func.func @transform_0(%arg0: i32) -> (i32, i32) {
    %c0_i32 = arith.constant 0 : i32
    %c0_i32_0 = arith.constant 0 : i32
    return %arg0, %c0_i32 : i32, i32
  }
  func.func @transform_1(%arg0: i32) -> (i32, i32) {
    %c0_i32 = arith.constant 0 : i32
    %c0_i32_0 = arith.constant 0 : i32
    %c0_i32_1 = arith.constant 0 : i32
    return %c0_i32, %c0_i32_0 : i32, i32
  }
  func.func @transform_2(%arg0: i32) -> (i32, i32) {
    %c0_i32 = arith.constant 0 : i32
    %c0_i32_0 = arith.constant 0 : i32
    %c0_i32_1 = arith.constant 0 : i32
    return %c0_i32, %c0_i32_0 : i32, i32
  }
  func.func @transform_3(%arg0: i32) -> (i32, i32) {
    %c0_i32 = arith.constant 0 : i32
    %c0_i32_0 = arith.constant 0 : i32
    return %arg0, %c0_i32 : i32, i32
  }
}

</mosaic_0001>

<bundles_post_ra>
// kernel: tpu_custom_call.1
= control target key start
LH: loop header
LB: loop body
LE: loop exit
PB: predicated region body
PF: predicated region fallthrough
CT: control target
= control target key end

     0   :  { %s389_s12 = smov 0   ;;  %s428_s0 = inlined_call_operand.vmem [shape: f32[512,4], index: 0, kind: input, shape index: {}]   ;;  %s429_s1 = inlined_call_operand.vmem [shape: f32[4,4], index: 1, kind: input, shape index: {}]   ;;  %s430_s2 = inlined_call_operand.vmem [shape: f32[1,4], index: 2, kind: input, shape index: {}]   ;;  %s431_s3 = inlined_call_operand.vmem [shape: f32[512,4], index: 3, kind: output, shape index: {}]  }
   0x1 LB: > { %s329_s13 = sadd.s32 4294967295, %s367_s12   ;;  %p333_p0 = scmp.ge.s32.totalorder %s367_s12, 1  ;;  %s367_s12 = sphi %s389_s12, %s13_s12  }
   0x2   : > { %p138_p1 = scmp.lt.s32.totalorder %s367_s12, 9 }
   0x4   : > { %p139_p2 = pnand %p333_p0, %p138_p1 }
   0x5   : > { %s334_s16 = sshll.u32 (!%p139_p2), %s329_s13, 3 }
   0x6   : > { %142 = sbr.rel (%p139_p2) target bundleno = 161 (0xa1), region = 32  ;;  %p163_p3 = scmp.lt.s32.totalorder (!%p139_p2), %s334_s16, 63 }
   0xb   : > { %v182_v0 = vld [vmem:[%s429_s1] sm:$0xf]  ;;  %vm212_vm0 = vcmask 1043456   ;;  %s433_s16 = smov (!%p163_p3, %s334_s16), 63  ;;  %vm187_vm1 = vcmask 31744  }
   0xc   : > { %350 = vmatpush.msk.msra.mxu2 %vm212_vm0, %v182_v0  ;;  %351 = vmatpush.msk.msra.mxu3 %vm212_vm0, %v182_v0  ;;  %s335_s17 = sshll.u32 %s433_s16, 3  ;;  %v360_v9 = vld [vmem:[%s430_s2] ss:$0 sm:$0xff] }
   0xd   : > { %338 = vmatpush.msk.msra.mxu0 %vm212_vm0, %v182_v0  ;;  %349 = vmatpush.msk.msra.mxu1 %vm212_vm0, %v182_v0  ;;  %s166_s20 = scalar_lea.vmem %s428_s0, %s335_s17  ;;  %s172_s25 = scalar_lea.vmem %s431_s3, %s335_s17 }
   0xe   : > { %v178_v1 = vld [vmem:[%s166_s20 + $0x20] sm:$0xff]  ;;  %v180_v2 = vld [vmem:[%s166_s20 + $0x30] sm:$0xff]  ;;  %v179_v5 = vld [vmem:[%s166_s20 + $0x28] sm:$0xff] }
   0xf   : > { %v174_v3 = vld [vmem:[%s166_s20] sm:$0xff]  ;;  %343 = vmatmul.msk.f32.vlgmr.msra.gmra.mxu2 %vm187_vm1, %v178_v1  ;;  %345 = vmatmul.msk.f32.vlgmr.msra.gmra.mxu3 %vm187_vm1, %v180_v2  ;;  %v176_v4 = vld [vmem:[%s166_s20 + $0x10] sm:$0xff]  ;;  %v181_v6 = vld [vmem:[%s166_s20 + $0x38] sm:$0xff] }
  0x10   : > { %339 = vmatmul.msk.f32.vlgmr.msra.gmra.mxu0 %vm187_vm1, %v174_v3  ;;  %341 = vmatmul.msk.f32.vlgmr.msra.gmra.mxu1 %vm187_vm1, %v176_v4  ;;  %v175_v7 = vld [vmem:[%s166_s20 + $0x8] sm:$0xff]  ;;  %v177_v8 = vld [vmem:[%s166_s20 + $0x18] sm:$0xff] }
  0x17   : > { %344 = vmatmul.msk.f32.gmra.mxu2 %vm187_vm1, %v179_v5  ;;  %346 = vmatmul.msk.f32.gmra.mxu3 %vm187_vm1, %v181_v6 }
  0x18   : > { %340 = vmatmul.msk.f32.gmra.mxu0 %vm187_vm1, %v175_v7  ;;  %342 = vmatmul.msk.f32.gmra.mxu1 %vm187_vm1, %v177_v8 }
  0x8d   : > { %v233_v10 = vpop.f32.mrf.mxu0  ;;  %v239_v11 = vpop.f32.mrf.mxu1 }
  0x8e   : > { %v234_v12 = vadd.f32 %v360_v9, %v233_v10  ;;  %v240_v13 = vadd.f32 %v360_v9, %v239_v11 }
  0x90   : > { %v257_v14 = vmax.f32 %v234_v12, 0.0  ;;  %v259_v15 = vmax.f32 %v240_v13, 0.0 }
  0x92   : > { %265 = vst.msk [vmem:[%s172_s25] sm:$0xff] %vm187_vm1, %v257_v14  ;;  %v245_v16 = vpop.f32.mrf.mxu2  ;;  %v251_v17 = vpop.f32.mrf.mxu3 }
  0x93   : > { %267 = vst.msk [vmem:[%s172_s25 + $0x10] sm:$0xff] %vm187_vm1, %v259_v15  ;;  %v246_v18 = vadd.f32 %v360_v9, %v245_v16  ;;  %v252_v19 = vadd.f32 %v360_v9, %v251_v17 }
  0x95   : > { %v261_v20 = vmax.f32 %v246_v18, 0.0  ;;  %v263_v21 = vmax.f32 %v252_v19, 0.0  ;;  %v236_v22 = vpop.f32.mrf.mxu0  ;;  %v242_v23 = vpop.f32.mrf.mxu1 }
  0x96   : > { %v237_v24 = vadd.f32 %v360_v9, %v236_v22  ;;  %v243_v25 = vadd.f32 %v360_v9, %v242_v23 }
  0x97   : > { %269 = vst.msk [vmem:[%s172_s25 + $0x20] sm:$0xff] %vm187_vm1, %v261_v20 }
  0x98   : > { %271 = vst.msk [vmem:[%s172_s25 + $0x30] sm:$0xff] %vm187_vm1, %v263_v21  ;;  %v258_v26 = vmax.f32 %v237_v24, 0.0  ;;  %v260_v27 = vmax.f32 %v243_v25, 0.0 }
  0x9a   : > { %266 = vst.msk [vmem:[%s172_s25 + $0x8] sm:$0xff] %vm187_vm1, %v258_v26  ;;  %v248_v28 = vpop.f32.mrf.mxu2  ;;  %v254_v29 = vpop.f32.mrf.mxu3 }
  0x9b   : > { %268 = vst.msk [vmem:[%s172_s25 + $0x18] sm:$0xff] %vm187_vm1, %v260_v27  ;;  %v249_v30 = vadd.f32 %v360_v9, %v248_v28  ;;  %v255_v31 = vadd.f32 %v360_v9, %v254_v29 }
  0x9d   : > { %v262_v32 = vmax.f32 %v249_v30, 0.0  ;;  %v264_v33 = vmax.f32 %v255_v31, 0.0 }
  0x9f   : > { %270 = vst.msk [vmem:[%s172_s25 + $0x28] sm:$0xff] %vm187_vm1, %v262_v32 }
  0xa0   : > { %272 = vst.msk [vmem:[%s172_s25 + $0x38] sm:$0xff] %vm187_vm1, %v264_v33 }
  0xa1 PF: > { %s13_s12 = sadd.s32 1, %s367_s12  }
  0xa2   : > { %p10_p4 = scmp.ge.s32.totalorder %s13_s12, 10  }
  0xa4   :  { %12 = sbr.rel (!%p10_p4) target bundleno = 1 (0x1), region = 62 }

</bundles_post_ra>
